<compile_context>
chip_gen: v7x
topology: tpu7x:2x2x1
jax: 0.10.0
libtpu: 0.0.40
codegen_flags: <defaults>
</compile_context>

<pallas_src>
import functools
import math

import jax
import jax.numpy as jnp
from jax import lax
from jax.experimental import pallas as pl
from jax.experimental.pallas import tpu as pltpu


def _flash_self_attn_kernel(gamma_ref, xq_ref, k_ref, v_ref, wq_ref, bq_ref, o_ref,
                            q_sc, m_sc, l_sc, acc_sc, *, hw, need_mask, bf16_exp):
    ki = pl.program_id(2)
    nk = pl.num_programs(2)

    @pl.when(ki == 0)
    def _init():
        # Q projection once per (batch, query-tile); bf16 MXU operands, f32 accumulate + bias.
        xq = xq_ref[0]                                                     # (TQ, C) bf16
        q = jnp.dot(xq, wq_ref[...],
                    preferred_element_type=jnp.float32) + bq_ref[...]      # (TQ, Cqp) f32
        q_sc[...] = q.astype(jnp.bfloat16)
        m_sc[...] = jnp.full_like(m_sc, -jnp.inf)
        l_sc[...] = jnp.zeros_like(l_sc)
        acc_sc[...] = jnp.zeros_like(acc_sc)

    k = k_ref[0]                                                           # (TK, Cqp) bf16
    v = v_ref[0]                                                           # (TK, C)   bf16
    tk = k.shape[0]

    # energy[j, i] = <q_j, k_i>  — contract channel dim of both operands (no explicit transpose).
    s = lax.dot_general(q_sc[...], k, (((1,), (1,)), ((), ())),
                        preferred_element_type=jnp.float32)                # (TQ, TK) f32

    if need_mask:
        # Padded (out-of-range) keys get a huge negative energy -> zero softmax weight.
        kidx = ki * tk + lax.broadcasted_iota(jnp.int32, (1, tk), 1)
        s = jnp.where(kidx < hw, s, -1e30)

    # Online softmax, stats in f32.
    m_prev = m_sc[...]
    m_new = jnp.maximum(m_prev, jnp.max(s, axis=-1, keepdims=True))        # (TQ, 1)
    alpha = jnp.exp(m_prev - m_new)
    if bf16_exp:
        # bf16 EUP (v6e/v7x): halves EUP occupancy; p is already bf16 for the PV matmul.
        p_mx = jnp.exp((s - m_new).astype(jnp.bfloat16))                   # (TQ, TK) bf16
        row_sum = jnp.sum(p_mx.astype(jnp.float32), axis=-1, keepdims=True)
    else:
        p = jnp.exp(s - m_new)                                             # (TQ, TK) f32
        row_sum = jnp.sum(p, axis=-1, keepdims=True)
        p_mx = p.astype(jnp.bfloat16)
    l_sc[...] = alpha * l_sc[...] + row_sum
    acc_sc[...] = alpha * acc_sc[...] + jnp.dot(
        p_mx, v, preferred_element_type=jnp.float32)                       # (TQ, C) f32
    m_sc[...] = m_new

    @pl.when(ki == nk - 1)
    def _finalize():
        # Normalize AFTER the PV matmul: one approx reciprocal per query row (EUP slot).
        inv_l = pl.reciprocal(l_sc[...], approx=True)                      # (TQ, 1)
        out = acc_sc[...] * inv_l                                          # (TQ, C)
        o_ref[0] = gamma_ref[0] * out + xq_ref[0].astype(jnp.float32)


def _chip_prefs():
    """Per-generation tile / VMEM / exp-dtype preferences."""
    kind = ""
    try:
        kind = jax.devices()[0].device_kind.lower()
    except Exception:
        pass
    if "v7" in kind:
        # 64 MiB VMEM/TC, 3.2 TB/s HBM: moderate tiles, modest VMEM cap, bf16 EUP.
        return dict(tq=512, tk=256, bf16_exp=True, vmem=24 * 1024 * 1024)
    if "v6" in kind:
        # 128 MiB VMEM, ~650 flop/byte: larger query tile to stay compute-bound, bf16 EUP.
        return dict(tq=1024, tk=256, bf16_exp=True, vmem=64 * 1024 * 1024)
    # v5e / v5p / unknown: no bf16 EUP assumed, conservative tiles and cap.
    return dict(tq=512, tk=256, bf16_exp=False, vmem=32 * 1024 * 1024)


def _tiles_and_pad(hw, pref_q, pref_k):
    """Return (tq, tk, hw_pad). Small HW -> single full-extent tile (no padding, no masking).
    Large HW -> fixed 128-multiple tiles; HW zero-padded up to a tile multiple (masked keys)."""
    if hw <= max(pref_q, pref_k):
        return hw, hw, hw
    tq, tk = pref_q, pref_k
    step = tq * tk // math.gcd(tq, tk)
    hw_pad = ((hw + step - 1) // step) * step
    return tq, tk, hw_pad


def self_attention_pallas(x_nchw, gamma, wq, bq, wk, bk, wv, bv,
                          tq_pref=None, tk_pref=None):
    """x_nchw: (B, C, H, W). Weights stored as (in_ch, out_ch), biases (out_ch,)."""
    B, C, H, W = x_nchw.shape
    HW = H * W
    Cq = wq.shape[1]
    LANE = 128
    cq_pad = ((Cq + LANE - 1) // LANE) * LANE   # lane-aligned Q/K width (zero-padded)

    prefs = _chip_prefs()
    tq_pref = prefs["tq"] if tq_pref is None else tq_pref
    tk_pref = prefs["tk"] if tk_pref is None else tk_pref
    tq, tk, hw_pad = _tiles_and_pad(HW, tq_pref, tk_pref)
    need_mask = hw_pad != HW

    f32, bf16 = jnp.float32, jnp.bfloat16

    # NCHW -> token layout (B, HW, C), bf16 for the HBM-streamed x.
    # TODO(synk): fold this transpose (and the inverse below) into the kernel by working
    # channel-major; kept token-major since it only needs well-supported matmul forms.
    x_tok = jnp.transpose(x_nchw.reshape(B, C, HW), (0, 2, 1))
    x_bf = x_tok.astype(bf16)

    # Zero-pad Q/K output channels to a lane multiple (padded cols contribute 0 to energy).
    wq_p = jnp.zeros((C, cq_pad), f32).at[:, :Cq].set(wq.astype(f32)).astype(bf16)
    bq_p = jnp.zeros((1, cq_pad), f32).at[0, :Cq].set(bq.astype(f32))
    wk_p = jnp.zeros((C, cq_pad), f32).at[:, :Cq].set(wk.astype(f32))
    bk_p = jnp.zeros((1, cq_pad), f32).at[0, :Cq].set(bk.astype(f32))

    # Hoisted K / V projections: once per batch, outside the flash loop (bf16 operands,
    # f32 accumulation + bias), stored bf16 and streamed into the kernel.
    k_all = (jnp.einsum('btc,co->bto', x_bf, wk_p.astype(bf16),
                        preferred_element_type=f32) + bk_p[None]).astype(bf16)      # (B, HW, Cqp)
    v_all = (jnp.einsum('btc,co->bto', x_bf, wv.astype(bf16),
                        preferred_element_type=f32)
             + bv.astype(f32)[None, None, :]).astype(bf16)                           # (B, HW, C)

    if need_mask:
        pad = hw_pad - HW
        x_bf = jnp.pad(x_bf, ((0, 0), (0, pad), (0, 0)))
        k_all = jnp.pad(k_all, ((0, 0), (0, pad), (0, 0)))
        v_all = jnp.pad(v_all, ((0, 0), (0, pad), (0, 0)))

    gamma1 = jnp.asarray(gamma, f32).reshape(1)

    nq, nkv = hw_pad // tq, hw_pad // tk
    # NOTE (v7x megacore): B*nq should be >= 2 (ideally even) so both TensorCores get work.

    kernel = functools.partial(_flash_self_attn_kernel, hw=HW, need_mask=need_mask,
                               bf16_exp=prefs["bf16_exp"])

    out_tok = pl.pallas_call(
        kernel,
        out_shape=jax.ShapeDtypeStruct((B, hw_pad, C), f32),
        grid=(B, nq, nkv),
        in_specs=[
            pl.BlockSpec(memory_space=pltpu.MemorySpace.SMEM),               # gamma (1,)
            pl.BlockSpec((1, tq, C), lambda b, qi, ki: (b, qi, 0)),          # x query tile (bf16)
            pl.BlockSpec((1, tk, cq_pad), lambda b, qi, ki: (b, ki, 0)),     # K tile (bf16)
            pl.BlockSpec((1, tk, C), lambda b, qi, ki: (b, ki, 0)),          # V tile (bf16)
            pl.BlockSpec((C, cq_pad), lambda b, qi, ki: (0, 0)),             # Wq (padded, bf16)
            pl.BlockSpec((1, cq_pad), lambda b, qi, ki: (0, 0)),             # bq (padded, f32)
        ],
        out_specs=pl.BlockSpec((1, tq, C), lambda b, qi, ki: (b, qi, 0)),
        scratch_shapes=[
            pltpu.VMEM((tq, cq_pad), bf16),    # q tile (bf16 MXU operand)
            pltpu.VMEM((tq, 1), f32),          # running max
            pltpu.VMEM((tq, 1), f32),          # running denominator
            pltpu.VMEM((tq, C), f32),          # output accumulator
        ],
        compiler_params=pltpu.CompilerParams(
            dimension_semantics=("parallel", "parallel", "arbitrary"),
            vmem_limit_bytes=prefs["vmem"],
        ),
    )(gamma1, x_bf, k_all, v_all, wq_p, bq_p)

    if need_mask:
        out_tok = out_tok[:, :HW, :]
    # token layout -> NCHW
    return jnp.transpose(out_tok, (0, 2, 1)).reshape(B, C, H, W)


def self_attention_ref(x, gamma, wq, bq, wk, bk, wv, bv):
    """Plain-JAX reference mirroring the PyTorch forward exactly (NCHW, f32)."""
    B, C, H, W = x.shape
    HW = H * W
    query = jnp.einsum('bchw,co->bohw', x, wq) + bq[None, :, None, None]
    key = jnp.einsum('bchw,co->bohw', x, wk) + bk[None, :, None, None]
    value = jnp.einsum('bchw,co->bohw', x, wv) + bv[None, :, None, None]
    query = jnp.transpose(query.reshape(B, -1, HW), (0, 2, 1))   # (B, HW, Cq)
    key = key.reshape(B, -1, HW)                                  # (B, Cq, HW)
    energy = jnp.einsum('bqc,bck->bqk', query, key)               # (B, HW, HW)
    attention = jax.nn.softmax(energy, axis=-1)
    value = value.reshape(B, -1, HW)                              # (B, C, HW)
    out = jnp.einsum('bck,bqk->bcq', value, attention)            # (B, C, HW)
    out = out.reshape(B, C, H, W)
    return gamma * out + x


def _make_params(key, C, Cq):
    kq, kk, kv, kbq, kbk, kbv = jax.random.split(key, 6)
    wq = jax.random.normal(kq, (C, Cq), dtype=jnp.float32) * 0.1
    wk = jax.random.normal(kk, (C, Cq), dtype=jnp.float32) * 0.1
    wv = jax.random.normal(kv, (C, C), dtype=jnp.float32) * 0.1
    bq = jax.random.normal(kbq, (Cq,), dtype=jnp.float32) * 0.1
    bk = jax.random.normal(kbk, (Cq,), dtype=jnp.float32) * 0.1
    bv = jax.random.normal(kbv, (C,), dtype=jnp.float32) * 0.1
    return wq, bq, wk, bk, wv, bv


if __name__ == "__main__":
    key = jax.random.PRNGKey(0)
    k1, k2, kp1, kp2 = jax.random.split(key, 4)

    # --- Test 1: main small case (single-tile path), in_channels divisible by 8. ---
    B, C, H, W = 2, 32, 8, 8
    Cq = C // 8
    x = jax.random.normal(k1, (B, C, H, W), dtype=jnp.float32)
    wq, bq, wk, bk, wv, bv = _make_params(kp1, C, Cq)
    # Module default is gamma=0 (output == x); use a nonzero value so the
    # attention path is actually exercised numerically.
    gamma = jnp.float32(0.5)

    out = self_attention_pallas(x, gamma, wq, bq, wk, bk, wv, bv)
    out = jax.block_until_ready(out)
    ref = self_attention_ref(x, gamma, wq, bq, wk, bk, wv, bv)
    assert out.shape == (B, C, H, W)
    # bf16 MXU operands / bf16 exp with f32 accumulation -> loosened tolerance vs f32 reference.
    assert jnp.allclose(out, ref, atol=2e-2, rtol=2e-2), "mismatch vs reference (test 1)"

    # --- Test 2: force the multi-tile online-softmax + padded/masked-key path. ---
    B2, C2, H2, W2 = 1, 16, 5, 9     # HW = 45, tiles forced to 32 -> hw_pad = 64, masking on
    Cq2 = C2 // 8
    x2 = jax.random.normal(k2, (B2, C2, H2, W2), dtype=jnp.float32)
    wq2, bq2, wk2, bk2, wv2, bv2 = _make_params(kp2, C2, Cq2)
    out2 = self_attention_pallas(x2, gamma, wq2, bq2, wk2, bk2, wv2, bv2,
                                 tq_pref=32, tk_pref=32)
    out2 = jax.block_until_ready(out2)
    ref2 = self_attention_ref(x2, gamma, wq2, bq2, wk2, bk2, wv2, bv2)
    assert out2.shape == (B2, C2, H2, W2)
    assert jnp.allclose(out2, ref2, atol=2e-2, rtol=2e-2), "mismatch vs reference (test 2)"

    print("KERNEL_OK")
</pallas_src>

<mosaic_0001>
module attributes {stable_mosaic.version = 11 : i64} {
  func.func @_flash_self_attn_kernel(%arg0: i32, %arg1: i32, %arg2: i32, %arg3: memref<1xf32, #tpu.memory_space<smem>>, %arg4: memref<1x64x32xbf16, #tpu.memory_space<vmem>>, %arg5: memref<1x64x128xbf16, #tpu.memory_space<vmem>>, %arg6: memref<1x64x32xbf16, #tpu.memory_space<vmem>>, %arg7: memref<32x128xbf16, #tpu.memory_space<vmem>>, %arg8: memref<1x128xf32, #tpu.memory_space<vmem>>, %arg9: memref<1x64x32xf32, #tpu.memory_space<vmem>>, %arg10: memref<64x128xbf16, #tpu.memory_space<vmem>>, %arg11: memref<64x1xf32, #tpu.memory_space<vmem>>, %arg12: memref<64x1xf32, #tpu.memory_space<vmem>>, %arg13: memref<64x32xf32, #tpu.memory_space<vmem>>) attributes {dimension_semantics = [#tpu.dimension_semantics<parallel>, #tpu.dimension_semantics<parallel>, #tpu.dimension_semantics<arbitrary>], iteration_bounds = array<i64: 2, 1, 1>, scalar_prefetch = 0 : i64, scratch_operands = 4 : i64, tpu.core_type = #tpu.core_type<tc>, window_params = [{transform_indices = @transform_0, window_bounds = array<i64: 1>}, {transform_indices = @transform_1, window_bounds = array<i64: 1, 64, 32>}, {transform_indices = @transform_2, window_bounds = array<i64: 1, 64, 128>}, {transform_indices = @transform_3, window_bounds = array<i64: 1, 64, 32>}, {pipeline_mode = #tpu.pipeline_mode<synchronous>, transform_indices = @transform_4, window_bounds = array<i64: 32, 128>}, {pipeline_mode = #tpu.pipeline_mode<synchronous>, transform_indices = @transform_5, window_bounds = array<i64: 1, 128>}, {transform_indices = @transform_6, window_bounds = array<i64: 1, 64, 32>}]} {
    %c0_i32 = arith.constant 0 : i32
    %0 = arith.cmpi eq, %arg2, %c0_i32 : i32
    %1 = arith.extui %0 : i1 to i32
    %c0_i32_0 = arith.constant 0 : i32
    %2 = arith.cmpi ne, %1, %c0_i32_0 : i32
    scf.if %2 {
      %c0_25 = arith.constant 0 : index
      %c0_26 = arith.constant 0 : index
      %c0_27 = arith.constant 0 : index
      %35 = vector.load %arg4[%c0_25, %c0_26, %c0_27] : memref<1x64x32xbf16, #tpu.memory_space<vmem>>, vector<1x64x32xbf16>
      %36 = vector.shape_cast %35 : vector<1x64x32xbf16> to vector<64x32xbf16>
      %c0_28 = arith.constant 0 : index
      %c0_29 = arith.constant 0 : index
      %37 = vector.load %arg7[%c0_28, %c0_29] : memref<32x128xbf16, #tpu.memory_space<vmem>>, vector<32x128xbf16>
      %cst_30 = arith.constant dense<0.000000e+00> : vector<64x128xf32>
      %38 = tpu.matmul %36, %37, %cst_30 {dimension_numbers = #tpu.dot_dimension_numbers<[1], [0], [0], [1], [0, 0, 1, 1], [], []>} : vector<64x32xbf16>, vector<32x128xbf16>, vector<64x128xf32> -> vector<64x128xf32>
      %c0_31 = arith.constant 0 : index
      %c0_32 = arith.constant 0 : index
      %39 = vector.load %arg8[%c0_31, %c0_32] : memref<1x128xf32, #tpu.memory_space<vmem>>, vector<1x128xf32>
      %40 = vector.broadcast %39 : vector<1x128xf32> to vector<64x128xf32>
      %41 = arith.addf %38, %40 : vector<64x128xf32>
      %42 = arith.truncf %41 : vector<64x128xf32> to vector<64x128xbf16>
      %c0_33 = arith.constant 0 : index
      %c0_34 = arith.constant 0 : index
      %43 = vector.load %arg10[%c0_33, %c0_34] : memref<64x128xbf16, #tpu.memory_space<vmem>>, vector<64x128xbf16>
      tpu.vector_store %arg10[%c0_33, %c0_34], %42 {strides = array<i32>} : memref<64x128xbf16, #tpu.memory_space<vmem>>, vector<64x128xbf16>,
      %cst_35 = arith.constant 0xFF800000 : f32
      %44 = vector.broadcast %cst_35 : f32 to vector<64x1xf32>
      %c0_36 = arith.constant 0 : index
      %c0_37 = arith.constant 0 : index
      %45 = vector.load %arg11[%c0_36, %c0_37] : memref<64x1xf32, #tpu.memory_space<vmem>>, vector<64x1xf32>
      tpu.vector_store %arg11[%c0_36, %c0_37], %44 {strides = array<i32>} : memref<64x1xf32, #tpu.memory_space<vmem>>, vector<64x1xf32>,
      %cst_38 = arith.constant 0.000000e+00 : f32
      %46 = vector.broadcast %cst_38 : f32 to vector<64x1xf32>
      %c0_39 = arith.constant 0 : index
      %c0_40 = arith.constant 0 : index
      %47 = vector.load %arg12[%c0_39, %c0_40] : memref<64x1xf32, #tpu.memory_space<vmem>>, vector<64x1xf32>
      tpu.vector_store %arg12[%c0_39, %c0_40], %46 {strides = array<i32>} : memref<64x1xf32, #tpu.memory_space<vmem>>, vector<64x1xf32>,
      %cst_41 = arith.constant 0.000000e+00 : f32
      %48 = vector.broadcast %cst_41 : f32 to vector<64x32xf32>
      %c0_42 = arith.constant 0 : index
      %c0_43 = arith.constant 0 : index
      %49 = vector.load %arg13[%c0_42, %c0_43] : memref<64x32xf32, #tpu.memory_space<vmem>>, vector<64x32xf32>
      tpu.vector_store %arg13[%c0_42, %c0_43], %48 {strides = array<i32>} : memref<64x32xf32, #tpu.memory_space<vmem>>, vector<64x32xf32>,
    } else {
    }
    %c0 = arith.constant 0 : index
    %c0_1 = arith.constant 0 : index
    %c0_2 = arith.constant 0 : index
    %3 = vector.load %arg5[%c0, %c0_1, %c0_2] : memref<1x64x128xbf16, #tpu.memory_space<vmem>>, vector<1x64x128xbf16>
    %4 = vector.shape_cast %3 : vector<1x64x128xbf16> to vector<64x128xbf16>
    %c0_3 = arith.constant 0 : index
    %c0_4 = arith.constant 0 : index
    %c0_5 = arith.constant 0 : index
    %5 = vector.load %arg6[%c0_3, %c0_4, %c0_5] : memref<1x64x32xbf16, #tpu.memory_space<vmem>>, vector<1x64x32xbf16>
    %6 = vector.shape_cast %5 : vector<1x64x32xbf16> to vector<64x32xbf16>
    %c0_6 = arith.constant 0 : index
    %c0_7 = arith.constant 0 : index
    %7 = vector.load %arg10[%c0_6, %c0_7] : memref<64x128xbf16, #tpu.memory_space<vmem>>, vector<64x128xbf16>
    %cst = arith.constant dense<0.000000e+00> : vector<64x64xf32>
    %8 = tpu.matmul %7, %4, %cst {dimension_numbers = #tpu.dot_dimension_numbers<[1], [1], [0], [0], [0, 0, 1, 0], [], []>} : vector<64x128xbf16>, vector<64x128xbf16>, vector<64x64xf32> -> vector<64x64xf32>
    %c0_8 = arith.constant 0 : index
    %c0_9 = arith.constant 0 : index
    %9 = vector.load %arg11[%c0_8, %c0_9] : memref<64x1xf32, #tpu.memory_space<vmem>>, vector<64x1xf32>
    %cst_10 = arith.constant dense<0xFF800000> : vector<64xf32>
    %10 = vector.multi_reduction <maximumf>, %8, %cst_10 [1] : vector<64x64xf32> to vector<64xf32>
    %11 = vector.shape_cast %10 : vector<64xf32> to vector<64x1xf32>
    %12 = arith.maximumf %9, %11 : vector<64x1xf32>
    %13 = arith.subf %9, %12 : vector<64x1xf32>
    %14 = math.exp %13 : vector<64x1xf32>
    %15 = vector.broadcast %12 : vector<64x1xf32> to vector<64x64xf32>
    %16 = arith.subf %8, %15 : vector<64x64xf32>
    %17 = math.exp %16 : vector<64x64xf32>
    %cst_11 = arith.constant dense<0.000000e+00> : vector<64xf32>
    %18 = vector.multi_reduction <add>, %17, %cst_11 [1] : vector<64x64xf32> to vector<64xf32>
    %19 = vector.shape_cast %18 : vector<64xf32> to vector<64x1xf32>
    %20 = arith.truncf %17 : vector<64x64xf32> to vector<64x64xbf16>
    %c0_12 = arith.constant 0 : index
    %c0_13 = arith.constant 0 : index
    %21 = vector.load %arg12[%c0_12, %c0_13] : memref<64x1xf32, #tpu.memory_space<vmem>>, vector<64x1xf32>
    %22 = arith.mulf %14, %21 : vector<64x1xf32>
    %23 = arith.addf %22, %19 : vector<64x1xf32>
    %c0_14 = arith.constant 0 : index
    %c0_15 = arith.constant 0 : index
    %24 = vector.load %arg12[%c0_14, %c0_15] : memref<64x1xf32, #tpu.memory_space<vmem>>, vector<64x1xf32>
    tpu.vector_store %arg12[%c0_14, %c0_15], %23 {strides = array<i32>} : memref<64x1xf32, #tpu.memory_space<vmem>>, vector<64x1xf32>,
    %c0_16 = arith.constant 0 : index
    %c0_17 = arith.constant 0 : index
    %25 = vector.load %arg13[%c0_16, %c0_17] : memref<64x32xf32, #tpu.memory_space<vmem>>, vector<64x32xf32>
    %26 = vector.broadcast %14 : vector<64x1xf32> to vector<64x32xf32>
    %27 = arith.mulf %26, %25 : vector<64x32xf32>
    %cst_18 = arith.constant dense<0.000000e+00> : vector<64x32xf32>
    %28 = tpu.matmul %20, %6, %cst_18 {dimension_numbers = #tpu.dot_dimension_numbers<[1], [0], [0], [1], [0, 0, 1, 1], [], []>} : vector<64x64xbf16>, vector<64x32xbf16>, vector<64x32xf32> -> vector<64x32xf32>
    %29 = arith.addf %27, %28 : vector<64x32xf32>
    %c0_19 = arith.constant 0 : index
    %c0_20 = arith.constant 0 : index
    %30 = vector.load %arg13[%c0_19, %c0_20] : memref<64x32xf32, #tpu.memory_space<vmem>>, vector<64x32xf32>
    tpu.vector_store %arg13[%c0_19, %c0_20], %29 {strides = array<i32>} : memref<64x32xf32, #tpu.memory_space<vmem>>, vector<64x32xf32>,
    %c0_21 = arith.constant 0 : index
    %c0_22 = arith.constant 0 : index
    %31 = vector.load %arg11[%c0_21, %c0_22] : memref<64x1xf32, #tpu.memory_space<vmem>>, vector<64x1xf32>
    tpu.vector_store %arg11[%c0_21, %c0_22], %12 {strides = array<i32>} : memref<64x1xf32, #tpu.memory_space<vmem>>, vector<64x1xf32>,
    %c0_i32_23 = arith.constant 0 : i32
    %32 = arith.cmpi eq, %arg2, %c0_i32_23 : i32
    %33 = arith.extui %32 : i1 to i32
    %c0_i32_24 = arith.constant 0 : i32
    %34 = arith.cmpi ne, %33, %c0_i32_24 : i32
    scf.if %34 {
      %c0_25 = arith.constant 0 : index
      %c0_26 = arith.constant 0 : index
      %35 = vector.load %arg12[%c0_25, %c0_26] : memref<64x1xf32, #tpu.memory_space<vmem>>, vector<64x1xf32>
      %36 = tpu.reciprocal %35 {approx = true} : vector<64x1xf32> -> vector<64x1xf32>
      %c0_27 = arith.constant 0 : index
      %c0_28 = arith.constant 0 : index
      %37 = vector.load %arg13[%c0_27, %c0_28] : memref<64x32xf32, #tpu.memory_space<vmem>>, vector<64x32xf32>
      %38 = vector.broadcast %36 : vector<64x1xf32> to vector<64x32xf32>
      %39 = arith.mulf %37, %38 : vector<64x32xf32>
      %c0_29 = arith.constant 0 : index
      %40 = memref.load %arg3[%c0_29] : memref<1xf32, #tpu.memory_space<smem>>
      %41 = vector.broadcast %40 : f32 to vector<64x32xf32>
      %42 = arith.mulf %41, %39 : vector<64x32xf32>
      %c0_30 = arith.constant 0 : index
      %c0_31 = arith.constant 0 : index
      %c0_32 = arith.constant 0 : index
      %43 = vector.load %arg4[%c0_30, %c0_31, %c0_32] : memref<1x64x32xbf16, #tpu.memory_space<vmem>>, vector<1x64x32xbf16>
      %44 = vector.shape_cast %43 : vector<1x64x32xbf16> to vector<64x32xbf16>
      %45 = arith.extf %44 : vector<64x32xbf16> to vector<64x32xf32>
      %46 = arith.addf %42, %45 : vector<64x32xf32>
      %c0_33 = arith.constant 0 : index
      %c0_34 = arith.constant 0 : index
      %c0_35 = arith.constant 0 : index
      %47 = vector.load %arg9[%c0_33, %c0_34, %c0_35] : memref<1x64x32xf32, #tpu.memory_space<vmem>>, vector<1x64x32xf32>
      %48 = vector.shape_cast %47 : vector<1x64x32xf32> to vector<64x32xf32>
      %49 = vector.shape_cast %46 : vector<64x32xf32> to vector<1x64x32xf32>
      tpu.vector_store %arg9[%c0_33, %c0_34, %c0_35], %49 {strides = array<i32>} : memref<1x64x32xf32, #tpu.memory_space<vmem>>, vector<1x64x32xf32>,
    } else {
    }
    return
  }
  func.func @transform_0(%arg0: i32, %arg1: i32, %arg2: i32) -> i32 {
    %c0_i32 = arith.constant 0 : i32
    %c0_i32_0 = arith.constant 0 : i32
    return %c0_i32 : i32
  }
  func.func @transform_1(%arg0: i32, %arg1: i32, %arg2: i32) -> (i32, i32, i32) {
    %c0_i32 = arith.constant 0 : i32
    %c0_i32_0 = arith.constant 0 : i32
    return %arg0, %arg1, %c0_i32 : i32, i32, i32
  }
  func.func @transform_2(%arg0: i32, %arg1: i32, %arg2: i32) -> (i32, i32, i32) {
    %c0_i32 = arith.constant 0 : i32
    %c0_i32_0 = arith.constant 0 : i32
    return %arg0, %arg2, %c0_i32 : i32, i32, i32
  }
  func.func @transform_3(%arg0: i32, %arg1: i32, %arg2: i32) -> (i32, i32, i32) {
    %c0_i32 = arith.constant 0 : i32
    %c0_i32_0 = arith.constant 0 : i32
    return %arg0, %arg2, %c0_i32 : i32, i32, i32
  }
  func.func @transform_4(%arg0: i32, %arg1: i32, %arg2: i32) -> (i32, i32) {
    %c0_i32 = arith.constant 0 : i32
    %c0_i32_0 = arith.constant 0 : i32
    %c0_i32_1 = arith.constant 0 : i32
    return %c0_i32, %c0_i32_0 : i32, i32
  }
  func.func @transform_5(%arg0: i32, %arg1: i32, %arg2: i32) -> (i32, i32) {
    %c0_i32 = arith.constant 0 : i32
    %c0_i32_0 = arith.constant 0 : i32
    %c0_i32_1 = arith.constant 0 : i32
    return %c0_i32, %c0_i32_0 : i32, i32
  }
  func.func @transform_6(%arg0: i32, %arg1: i32, %arg2: i32) -> (i32, i32, i32) {
    %c0_i32 = arith.constant 0 : i32
    %c0_i32_0 = arith.constant 0 : i32
    return %arg0, %arg1, %c0_i32 : i32, i32, i32
  }
}

</mosaic_0001>

<bundles_post_ra>
// kernel: tpu_custom_call.1
= control target key start
LH: loop header
LB: loop body
LE: loop exit
PB: predicated region body
PF: predicated region fallthrough
CT: control target
= control target key end

     0   :  { %s1545_s23 = smov 0   ;;  %s1547_s24 = smov 0   ;;  %s1830_s0 = inlined_call_operand.<no memory space> [shape: f32[1], index: 0, kind: input, shape index: {}]   ;;  %s1831_s1 = inlined_call_operand.vmem [shape: bf16[2,64,32], index: 1, kind: input, shape index: {}]   ;;  %s1832_s2 = inlined_call_operand.vmem [shape: bf16[2,64,128], index: 2, kind: input, shape index: {}]   ;;  %s1833_s3 = inlined_call_operand.vmem [shape: bf16[2,64,32], index: 3, kind: input, shape index: {}]   ;;  %s1834_s4 = inlined_call_operand.vmem [shape: bf16[32,128], index: 4, kind: input, shape index: {}]   ;;  %s1835_s5 = inlined_call_operand.vmem [shape: f32[1,128], index: 5, kind: input, shape index: {}]   ;;  %s1836_s6 = inlined_call_operand.vmem [shape: f32[2,64,32], index: 6, kind: output, shape index: {}]  }
   0x1   :  { %11 = sst [smem:[#allocation6]] %s1830_s0  ;;  %s1549_s25 = smov 0  }
   0x2 LB: > { %s36_s0 = sadd.s32 1, %s1498_s24  ;;  %p1266_p0 = scmp.ge.s32.totalorder %s1502_s25, 1  ;;  %s1502_s25 = sphi %s1549_s25, %s17_s25   ;;  %s1498_s24 = sphi %s1547_s24, %s1838_s24   ;;  %s1494_s23 = sphi %s1545_s23, %s1837_s23  }
   0x3   : > { %p38_p1 = scmp.ge.s32.totalorder %s36_s0, 2  ;;  %p275_p2 = scmp.lt.s32.totalorder %s1502_s25, 3 }
   0x5   : > { %s1840_s0 = smov (%p38_p1, %s36_s0), 0  ;;  %p276_p3 = pnand %p1266_p0, %p275_p2 }
   0x6   : > { %v1418_v0 = vld [vmem:[%s1834_s4] sm:$0xff] (!%p276_p3)   ;;  %p332_p4 = scmp.lt.s32.totalorder (!%p276_p3), %s1494_s23, 1  ;;  %v1419_v1 = vld [vmem:[%s1834_s4 + $0x8] sm:$0xff] (!%p276_p3)   ;;  %vm427_vm0 = vcmask (!%p276_p3), 261120   ;;  %vm513_vm1 = vcmask (!%p276_p3), 7168   ;;  %v1504_v31 = vmov (!%p276_p3), -inf  }
   0x7   : > { %279 = sbr.rel (%p276_p3) target bundleno = 1064 (0x428), region = 44  ;;  %1345 = vmatprep.subr.bf16.mxu0 (!%p276_p3), %v1418_v0  ;;  %v1275_v11 = vld [vmem:[%s1835_s5] ss:$0 sm:$0xff] (!%p276_p3)  ;;  %516 = vst.msk [vmem:[#allocation3 + $0x10] sm:$0xff] (!%p276_p3), %vm513_vm1, %v1504_v31  ;;  %514 = vst.msk [vmem:[#allocation3] sm:$0xff] (!%p276_p3), %vm513_vm1, %v1504_v31  ;;  %vm655_vm2 = vcmask (!%p276_p3), 523264  }
   0x8   : > { %1346 = vmatpush3.bf16.msra.mxu0 (!%p276_p3), %v1418_v0  ;;  %515 = vst.msk [vmem:[#allocation3 + $0x8] sm:$0xff] (!%p276_p3), %vm513_vm1, %v1504_v31  ;;  %517 = vst.msk [vmem:[#allocation3 + $0x18] sm:$0xff] (!%p276_p3), %vm513_vm1, %v1504_v31  ;;  %v1505_v48 = vmov (!%p276_p3), 0   ;;  %v1506_v49 = vmov (!%p276_p3), 0.0   ;;  %s1094_s18 = sld [smem:[#allocation6]] (!%p276_p3) }
   0x9   : > { %1347 = vmatprep.subr.bf16.mxu0 (!%p276_p3), %v1419_v1  ;;  %518 = vst.msk [vmem:[#allocation3 + $0x20] sm:$0xff] (!%p276_p3), %vm513_vm1, %v1504_v31  ;;  %519 = vst.msk [vmem:[#allocation3 + $0x28] sm:$0xff] (!%p276_p3), %vm513_vm1, %v1504_v31  ;;  %1416 = vset.pattern.permute.xlu0 (!%p276_p3), %v1505_v48 }
   0xa   : > { %520 = vst.msk [vmem:[#allocation3 + $0x30] sm:$0xff] (!%p276_p3), %vm513_vm1, %v1504_v31  ;;  %521 = vst.msk [vmem:[#allocation3 + $0x38] sm:$0xff] (!%p276_p3), %vm513_vm1, %v1504_v31  ;;  %1417 = vset.pattern.permute.xlu1 (!%p276_p3), %v1505_v48 }
   0xb   : > { %524 = vst.msk [vmem:[#allocation4 + $0x10] sm:$0xff] (!%p276_p3), %vm513_vm1, %v1506_v49  ;;  %522 = vst.msk [vmem:[#allocation4] sm:$0xff] (!%p276_p3), %vm513_vm1, %v1506_v49 }
   0xc   : > { %1348 = vmatpush3.bf16.msra.mxu0 (!%p276_p3), %v1419_v1  ;;  %523 = vst.msk [vmem:[#allocation4 + $0x8] sm:$0xff] (!%p276_p3), %vm513_vm1, %v1506_v49  ;;  %525 = vst.msk [vmem:[#allocation4 + $0x18] sm:$0xff] (!%p276_p3), %vm513_vm1, %v1506_v49 }
   0xd   : > { %526 = vst.msk [vmem:[#allocation4 + $0x20] sm:$0xff] (!%p276_p3), %vm513_vm1, %v1506_v49  ;;  %527 = vst.msk [vmem:[#allocation4 + $0x28] sm:$0xff] (!%p276_p3), %vm513_vm1, %v1506_v49 }
   0xe   : > { %s1842_s23 = smov (!%p332_p4, %s1494_s23), 1  ;;  %528 = vst.msk [vmem:[#allocation4 + $0x30] sm:$0xff] %vm513_vm1, %v1506_v49  ;;  %529 = vst.msk [vmem:[#allocation4 + $0x38] sm:$0xff] %vm513_vm1, %v1506_v49  ;;  %v1651_v50 = vld [vmem:[#allocation3 + $0x10] sm:$0xff]  ;;  %v1653_v51 = vld [vmem:[#allocation3] sm:$0xff] }
   0xf   : > { %s1572_s30 = sshll.u32 %s1842_s23, 5  ;;  %530 = vst.msk [vmem:[#allocation5] sm:$0xff] %vm427_vm0, %v1506_v49  ;;  %531 = vst.msk [vmem:[#allocation5 + $0x8] sm:$0xff] %vm427_vm0, %v1506_v49  ;;  %v1661_v56 = vld [vmem:[#allocation3 + $0x18] sm:$0xff]  ;;  %v1668_v58 = vld [vmem:[#allocation3 + $0x8] sm:$0xff]  ;;  %s1303_s19 = sshll.u32 %s1842_s23, 6 }
  0x10   : > { %s1578_s9 = scalar_lea.vmem %s1831_s1, %s1572_s30  ;;  %s349_s12 = scalar_lea.vmem %s1832_s2, %s1572_s30  ;;  %532 = vst.msk [vmem:[#allocation5 + $0x10] sm:$0xff] %vm427_vm0, %v1506_v49  ;;  %533 = vst.msk [vmem:[#allocation5 + $0x18] sm:$0xff] %vm427_vm0, %v1506_v49  ;;  %v1686_v1 = vld [vmem:[#allocation3 + $0x20] sm:$0xff] }
  0x11   : > { %v1420_v2 = vld [vmem:[%s1578_s9] sm:$0xff]   ;;  %v1421_v3 = vld [vmem:[%s1578_s9 + $0x8] sm:$0xff]   ;;  %v1422_v4 = vld [vmem:[%s1578_s9 + $0x10] sm:$0xff]   ;;  %534 = vst.msk [vmem:[#allocation5 + $0x20] sm:$0xff] %vm427_vm0, %v1506_v49  ;;  %s359_s17 = scalar_lea.vmem %s1833_s3, %s1572_s30  ;;  %s1801_s22 = scalar_lea.vmem %s1836_s6, %s1303_s19 }
  0x12   : > { %1349 = vmatprep.mubr.msk.bf16.mxu0 %vm427_vm0, %v1420_v2  ;;  %v1424_v5 = vld [vmem:[%s349_s12] sm:$0xff]   ;;  %v1425_v6 = vld [vmem:[%s349_s12 + $0x8] sm:$0xff]   ;;  %v1423_v7 = vld [vmem:[%s1578_s9 + $0x18] sm:$0xff]   ;;  %535 = vst.msk [vmem:[#allocation5 + $0x28] sm:$0xff] %vm427_vm0, %v1506_v49 }
  0x13   : > { %1350 = vmatmul.mubr.msk.bf16.vlgmr.msra.gmra.mrb[0].mxu0 %vm427_vm0, %v1421_v3  ;;  %1357 = vmatprep.subr.bf16.mxu1 %v1424_v5  ;;  %v1426_v8 = vld [vmem:[%s349_s12 + $0x10] sm:$0xff]   ;;  %v1427_v9 = vld [vmem:[%s349_s12 + $0x18] sm:$0xff]   ;;  %536 = vst.msk [vmem:[#allocation5 + $0x30] sm:$0xff] %vm427_vm0, %v1506_v49  ;;  %537 = vst.msk [vmem:[#allocation5 + $0x38] sm:$0xff] %vm427_vm0, %v1506_v49 }
  0x14   : > { %1353 = vmatprep.mubr.msk.bf16.mxu0 %vm427_vm0, %v1422_v4  ;;  %1358 = vmatpush3.bf16.xpose.msra.mxu1 %v1424_v5  ;;  %v1692_v4 = vld [vmem:[#allocation3 + $0x28] sm:$0xff] }
  0x15   : > { %1359 = vmatprep.subr.bf16.mxu1 %v1425_v6 }
  0x1b   : > { %1354 = vmatmul.mubr.msk.bf16.gmra.mrb[4].mxu0 %vm427_vm0, %v1423_v7 }
  0x1c   : > { %1360 = vmatpush3.bf16.xpose.msra.mxu1 %v1425_v6  ;;  %v1697_v6 = vld [vmem:[#allocation3 + $0x30] sm:$0xff] }
  0x1d   : > { %1361 = vmatprep.subr.bf16.mxu1 %v1426_v8 }
  0x24   : > { %1362 = vmatpush3.bf16.xpose.msra.mxu1 %v1426_v8  ;;  %v1704_v8 = vld [vmem:[#allocation3 + $0x38] sm:$0xff] }
  0x25   : > { %1363 = vmatprep.subr.bf16.mxu1 %v1427_v9 }
  0x2c   : > { %1364 = vmatpush3.bf16.xpose.msra.mxu1 %v1427_v9  ;;  %v1428_v9 = vld [vmem:[%s359_s17] sm:$0xff]  }
  0x2d   : > { %1373 = vmatprep.subr.bf16.mxu0 %v1428_v9 }
  0x2e   : > { %1374 = vmatpush3.bf16.msra.mxu0 %v1428_v9 }
  0xe6   : > { %v1351_v10 = vpop.f32.mrb[0].mxu0 }
  0xe7   : > { %v474_v12 = vpop.f32.mrb[1].mxu0  ;;  %v483_v14 = vadd.f32 %v1351_v10, %v1275_v11 }
  0xe8   : > { %v1352_v13 = vpop.f32.mrb[2].mxu0  ;;  %v475_v17 = vadd.f32 %v1275_v11, %v474_v12 }
  0xe9   : > { %v486_v15 = vadd.f32 %v1352_v13, %v1275_v11  ;;  %v477_v16 = vpop.f32.mrb[3].mxu0 }
  0xea   : > { %v478_v18 = vadd.f32 %v1275_v11, %v477_v16  ;;  %v1429_v16 = vld [vmem:[%s359_s17 + $0x8] sm:$0xff]  }
  0xeb   : > { %v506_v19 = vpack.c.bf16 %v486_v15, %v483_v14  ;;  %1375 = vmatprep.subr.bf16.mxu0 %v1429_v16 }
  0xec   : > { %v505_v20 = vpack.c.bf16 %v478_v18, %v475_v17  ;;  %1376 = vmatpush3.bf16.msra.mxu0 %v1429_v16 }
  0xee   : > { %v1355_v21 = vpop.f32.mrb[4].mxu0  ;;  %1365 = vmatprep.mubr.bf16.mxu1 %v505_v20  ;;  %v1430_v20 = vld [vmem:[%s359_s17 + $0x10] sm:$0xff]  }
  0xef   : > { %v490_v22 = vpop.f32.mrb[5].mxu0  ;;  %1366 = vmatmul.mubr.bf16.vlgmr.msra.gmra.mrb[0].mxu1 %v506_v19  ;;  %v499_v24 = vadd.f32 %v1355_v21, %v1275_v11  ;;  %1377 = vmatprep.subr.bf16.mxu0 %v1430_v20  ;;  %v1431_v21 = vld [vmem:[%s359_s17 + $0x18] sm:$0xff]  }
  0xf0   : > { %v1356_v23 = vpop.f32.mrb[6].mxu0  ;;  %v491_v27 = vadd.f32 %v1275_v11, %v490_v22  ;;  %1378 = vmatpush3.bf16.msra.mxu0 %v1430_v20 }
  0xf1   : > { %v502_v25 = vadd.f32 %v1356_v23, %v1275_v11  ;;  %v493_v26 = vpop.f32.mrb[7].mxu0  ;;  %1379 = vmatprep.subr.bf16.mxu0 %v1431_v21 }
  0xf2   : > { %v494_v28 = vadd.f32 %v1275_v11, %v493_v26 }
  0xf3   : > { %v508_v29 = vpack.c.bf16 %v502_v25, %v499_v24 }
  0xf4   : > { %v507_v30 = vpack.c.bf16 %v494_v28, %v491_v27  ;;  %1380 = vmatpush3.bf16.msra.mxu0 %v1431_v21 }
  0xf6   : > { %1369 = vmatprep.mubr.bf16.mxu1 %v507_v30 }
  0xf7   : > { %1370 = vmatmul.mubr.bf16.gmra.mrb[4].mxu1 %v508_v29 }
 0x1c2   : > { %v1603_v32 = vpop.f32.mrb[0].mxu1 }
 0x1c3   : > { %v1605_v33 = vpop.f32.mrb[1].mxu1  ;;  %v662_v34 = vsel %vm655_vm2, %v1603_v32, -inf }
 0x1c4   : > { %663 = vmax.xlane.f32.xlu1 %v662_v34  ;;  %v1609_v35 = vpop.f32.mrb[2].mxu1  ;;  %v656_v36 = vsel %vm655_vm2, %v1605_v33, -inf }
 0x1c5   : > { %657 = vmax.xlane.f32.xlu0 %v656_v36  ;;  %v1613_v37 = vpop.f32.mrb[3].mxu1  ;;  %v665_v38 = vsel %vm655_vm2, %v1609_v35, -inf }
 0x1c6   : > { %v659_v39 = vsel %vm655_vm2, %v1613_v37, -inf }
 0x1c8   : > { %666 = vmax.xlane.f32.xlu1 %v665_v38 }
 0x1c9   : > { %660 = vmax.xlane.f32.xlu0 %v659_v39 }
 0x1ca   : > { %v1619_v40 = vpop.f32.mrb[4].mxu1 }
 0x1cb   : > { %v1621_v41 = vpop.f32.mrb[5].mxu1  ;;  %v674_v46 = vsel %vm655_vm2, %v1619_v40, -inf }
 0x1cc   : > { %v1623_v42 = vpop.f32.mrb[6].mxu1  ;;  %v668_v43 = vsel %vm655_vm2, %v1621_v41, -inf }
 0x1cd   : > { %669 = vmax.xlane.f32.xlu0 %v668_v43  ;;  %v1627_v44 = vpop.f32.mrb[7].mxu1  ;;  %v677_v47 = vsel %vm655_vm2, %v1623_v42, -inf }
 0x1ce   : > { %v671_v45 = vsel %vm655_vm2, %v1627_v44, -inf }
 0x1cf   : > { %672 = vmax.xlane.f32.xlu1 %v671_v45 }
 0x1d1   : > { %675 = vmax.xlane.f32.xlu0 %v674_v46 }
 0x1d3   : > { %678 = vmax.xlane.f32.xlu1 %v677_v47 }
 0x251   : > { %v664_v52 = vpop.xlane.xlu1 %663 }
 0x252   : > { %v1656_v53 = vmax.f32 %v1651_v50, %v664_v52  ;;  %v658_v54 = vpop.xlane.xlu0 %657 }
 0x253   : > { %v1659_v55 = vmax.f32 %v1653_v51, %v658_v54 }
 0x254   : > { %v690_v57 = vsub.f32 %v1651_v50, %v1656_v53  ;;  %1013 = vst.msk [vmem:[#allocation3 + $0x10] sm:$0xff] %vm513_vm1, %v1656_v53  ;;  %724 = vperm.xlu1 %1417, %v1656_v53  }
 0x255   : > { %v688_v59 = vsub.f32 %v1653_v51, %v1659_v55  ;;  %1011 = vst.msk [vmem:[#allocation3] sm:$0xff] %vm513_vm1, %v1659_v55  ;;  %v667_v60 = vpop.xlane.xlu1 %666  ;;  %714 = vperm.xlu0 %1416, %v1659_v55  }
 0x256   : > { %v1676_v61 = vmax.f32 %v1661_v56, %v667_v60  ;;  %v661_v62 = vpop.xlane.xlu0 %660 }
 0x257   : > { %v1679_v63 = vmax.f32 %v1668_v58, %v661_v62 }
 0x258   : > { %v691_v0 = vsub.f32 %v1661_v56, %v1676_v61  ;;  %1014 = vst.msk [vmem:[#allocation3 + $0x18] sm:$0xff] %vm513_vm1, %v1676_v61  ;;  %729 = vperm.xlu1 %1417, %v1676_v61  }
 0x259   : > { %v689_v2 = vsub.f32 %v1668_v58, %v1679_v63  ;;  %1012 = vst.msk [vmem:[#allocation3 + $0x8] sm:$0xff] %vm513_vm1, %v1679_v63 }
 0x25a   : > { %v670_v3 = vpop.xlane.xlu0 %669 }
 0x25b   : > { %v1695_v5 = vmax.f32 %v1686_v1, %v670_v3 }
 0x25c   : > { %719 = vperm.xlu1 %1417, %v1679_v63   ;;  %v673_v7 = vpop.xlane.xlu1 %672 }
 0x25d   : > { %v692_v10 = vsub.f32 %v1686_v1, %v1695_v5  ;;  %1015 = vst.msk [vmem:[#allocation3 + $0x20] sm:$0xff] %vm513_vm1, %v1695_v5  ;;  %v1711_v11 = vmax.f32 %v1692_v4, %v673_v7 }
 0x25e   : > { %v676_v12 = vpop.xlane.xlu0 %675 }
 0x25f   : > { %v693_v13 = vsub.f32 %v1692_v4, %v1711_v11  ;;  %1016 = vst.msk [vmem:[#allocation3 + $0x28] sm:$0xff] %vm513_vm1, %v1711_v11  ;;  %v1718_v14 = vmax.f32 %v1697_v6, %v676_v12  ;;  %v704_v58 = vmul.f32 1.442695, %v692_v10  ;;  %v804_v4 = vld [vmem:[#allocation4] sm:$0xff] }
 0x260   : > { %v679_v15 = vpop.xlane.xlu1 %678 }
 0x261   : > { %v694_v17 = vsub.f32 %v1697_v6, %v1718_v14  ;;  %1017 = vst.msk [vmem:[#allocation3 + $0x30] sm:$0xff] %vm513_vm1, %v1718_v14  ;;  %v1725_v18 = vmax.f32 %v1704_v8, %v679_v15  ;;  %744 = vperm.xlu1 %1417, %v1718_v14   ;;  %v706_v51 = vmul.f32 1.442695, %v693_v13  ;;  %v807_v13 = vld [vmem:[#allocation4 + $0x18] sm:$0xff] }
 0x263   : > { %v695_v19 = vsub.f32 %v1704_v8, %v1725_v18  ;;  %1018 = vst.msk [vmem:[#allocation3 + $0x38] sm:$0xff] %vm513_vm1, %v1725_v18  ;;  %v708_v50 = vmul.f32 1.442695, %v694_v17 }
 0x265   : > { %734 = vperm.xlu1 %1417, %v1695_v5   ;;  %v710_v53 = vmul.f32 1.442695, %v695_v19 }
 0x269   : > { %739 = vperm.xlu1 %1417, %v1711_v11  }
 0x26d   : > { %749 = vperm.xlu1 %1417, %v1725_v18   ;;  %v805_v18 = vld [vmem:[#allocation4 + $0x8] sm:$0xff] }
 0x2d3   : > { %v725_v22 = vpop.permute.xlu1 %724 }
 0x2d4   : > { %v754_v23 = vsub.f32 %v1603_v32, %v725_v22  ;;  %v715_v24 = vpop.permute.xlu0 %714 }
 0x2d5   : > { %v752_v25 = vsub.f32 %v1605_v33, %v715_v24 }
 0x2d6   : > { %v764_v26 = vmul.f32 1.442695, %v754_v23 }
 0x2d7   : > { %v760_v27 = vmul.f32 1.442695, %v752_v25  ;;  %v730_v28 = vpop.permute.xlu1 %729 }
 0x2d8   : > { %1432 = vpow2.f32 %v764_v26  ;;  %v755_v29 = vsub.f32 %v1609_v35, %v730_v28  ;;  %v698_v26 = vmul.f32 1.442695, %v689_v2  ;;  %v700_v28 = vmul.f32 1.442695, %v690_v57  ;;  %v806_v2 = vld [vmem:[#allocation4 + $0x10] sm:$0xff] }
 0x2d9   : > { %1434 = vpow2.f32 %v760_v27  ;;  %v696_v27 = vmul.f32 1.442695, %v688_v59 }
 0x2da   : > { %v766_v30 = vmul.f32 1.442695, %v755_v29  ;;  %v702_v29 = vmul.f32 1.442695, %v691_v0 }
 0x2db   : > { %v720_v31 = vpop.permute.xlu1 %719 }
 0x2dc   : > { %1436 = vpow2.f32 %v766_v30  ;;  %v753_v34 = vsub.f32 %v1613_v37, %v720_v31 }
 0x2de   : > { %v762_v36 = vmul.f32 1.442695, %v753_v34 }
 0x2e0   : > { %1438 = vpow2.f32 %v762_v36  ;;  %v745_v38 = vpop.permute.xlu1 %744 }
 0x2e1   : > { %v758_v43 = vsub.f32 %v1619_v40, %v745_v38 }
 0x2e2   : > { %v1433_v39 = vpop.eup %1432 }
 0x2e3   : > { %v1435_v32 = vpop.eup %1434  ;;  %v782_v33 = vsel %vm655_vm2, %v1433_v39, 0.0  ;;  %v772_v49 = vmul.f32 1.442695, %v758_v43 }
 0x2e4   : > { %783 = vadd.xlane.f32.xlu0 %v782_v33  ;;  %v735_v45 = vpop.permute.xlu1 %734  ;;  %v776_v46 = vsel %vm655_vm2, %v1435_v32, 0.0 }
 0x2e5   : > { %v756_v35 = vsub.f32 %v1621_v41, %v735_v45  ;;  %777 = vadd.xlane.f32.xlu1 %v776_v46  ;;  %v810_v46 = vld [vmem:[#allocation4 + $0x30] sm:$0xff] }
 0x2e6   : > { %v1437_v47 = vpop.eup %1436 }
 0x2e7   : > { %v801_v48 = vpack.c.bf16 %v1437_v47, %v1433_v39  ;;  %v768_v37 = vmul.f32 1.442695, %v756_v35  ;;  %v785_v52 = vsel %vm655_vm2, %v1437_v47, 0.0  ;;  %v809_v35 = vld [vmem:[#allocation4 + $0x28] sm:$0xff] }
 0x2e8   : > { %v740_v54 = vpop.permute.xlu1 %739 }
 0x2e9   : > { %1440 = vpow2.f32 %v768_v37  ;;  %v757_v60 = vsub.f32 %v1627_v44, %v740_v54  ;;  %786 = vadd.xlane.f32.xlu1 %v785_v52 }
 0x2ea   : > { %v1439_v40 = vpop.eup %1438  ;;  %1442 = vpow2.f32 %v772_v49 }
 0x2eb   : > { %v770_v62 = vmul.f32 1.442695, %v757_v60  ;;  %v779_v3 = vsel %vm655_vm2, %v1439_v40, 0.0  ;;  %v800_v7 = vpack.c.bf16 %v1439_v40, %v1435_v32  ;;  %v808_v32 = vld [vmem:[#allocation4 + $0x20] sm:$0xff]  ;;  %v811_v40 = vld [vmem:[#allocation4 + $0x38] sm:$0xff] }
 0x2ec   : > { %780 = vadd.xlane.f32.xlu0 %v779_v3  ;;  %v750_v41 = vpop.permute.xlu1 %749 }
 0x2ed   : > { %1444 = vpow2.f32 %v770_v62  ;;  %v759_v9 = vsub.f32 %v1623_v42, %v750_v41  ;;  %1381 = vmatprep.mubr.msk.bf16.mxu0 %vm655_vm2, %v800_v7 }
 0x2ee   : > { %1382 = vmatmul.mubr.msk.bf16.vlgmr.msra.gmra.mrb[8].mxu0 %vm655_vm2, %v801_v48 }
 0x2ef   : > { %v774_v12 = vmul.f32 1.442695, %v759_v9 }
 0x2f1   : > { %1446 = vpow2.f32 %v774_v12 }
 0x2f2   : > { %1448 = vpow2.f32 %v698_v26 }
 0x2f3   : > { %v1441_v15 = vpop.eup %1440  ;;  %1450 = vpow2.f32 %v696_v27 }
 0x2f4   : > { %v788_v44 = vsel %vm655_vm2, %v1441_v15, 0.0  ;;  %v1443_v16 = vpop.eup %1442  ;;  %1452 = vpow2.f32 %v700_v28  ;;  %v839_v28 = vld [vmem:[#allocation5 + $0x10] sm:$0xff] }
 0x2f5   : > { %789 = vadd.xlane.f32.xlu0 %v788_v44  ;;  %v794_v21 = vsel %vm655_vm2, %v1443_v16, 0.0  ;;  %1454 = vpow2.f32 %v702_v29 }
 0x2f6   : > { %1456 = vpow2.f32 %v704_v58  ;;  %v837_v58 = vld [vmem:[#allocation5] sm:$0xff] }
 0x2f7   : > { %v1445_v20 = vpop.eup %1444  ;;  %1458 = vpow2.f32 %v706_v51  ;;  %v840_v51 = vld [vmem:[#allocation5 + $0x18] sm:$0xff] }
 0x2f8   : > { %v791_v22 = vsel %vm655_vm2, %v1445_v20, 0.0  ;;  %v802_v23 = vpack.c.bf16 %v1445_v20, %v1441_v15  ;;  %1460 = vpow2.f32 %v708_v50 }
 0x2f9   : > { %795 = vadd.xlane.f32.xlu0 %v794_v21  ;;  %792 = vadd.xlane.f32.xlu1 %v791_v22  ;;  %1462 = vpow2.f32 %v710_v53  ;;  %v838_v53 = vld [vmem:[#allocation5 + $0x8] sm:$0xff] }
 0x2fa   : > { %1385 = vmatprep.mubr.msk.bf16.mxu0 %vm655_vm2, %v802_v23 }
 0x2fb   : > { %v1447_v42 = vpop.eup %1446 }
 0x2fc   : > { %v797_v24 = vsel %vm655_vm2, %v1447_v42, 0.0  ;;  %v803_v25 = vpack.c.bf16 %v1447_v42, %v1443_v16  ;;  %v1449_v55 = vpop.eup %1448 }
 0x2fd   : > { %798 = vadd.xlane.f32.xlu1 %v797_v24  ;;  %v1451_v56 = vpop.eup %1450  ;;  %v813_v31 = vmul.f32 %v1449_v55, %v805_v18 }
 0x2fe   : > { %1386 = vmatmul.mubr.msk.bf16.gmra.mrb[12].mxu0 %vm655_vm2, %v803_v25  ;;  %v1453_v57 = vpop.eup %1452  ;;  %v812_v8 = vmul.f32 %v1451_v56, %v804_v4 }
 0x2ff   : > { %v1455_v59 = vpop.eup %1454  ;;  %v814_v5 = vmul.f32 %v1453_v57, %v806_v2 }
 0x300   : > { %v1457_v61 = vpop.eup %1456  ;;  %v815_v17 = vmul.f32 %v1455_v59, %v807_v13 }
 0x301   : > { %v1459_v63 = vpop.eup %1458  ;;  %v816_v33 = vmul.f32 %v1457_v61, %v808_v32 }
 0x302   : > { %v1461_v0 = vpop.eup %1460  ;;  %v817_v37 = vmul.f32 %v1459_v63, %v809_v35 }
 0x303   : > { %v1463_v1 = vpop.eup %1462  ;;  %v818_v49 = vmul.f32 %v1461_v0, %v810_v46 }
 0x304   : > { %v819_v7 = vmul.f32 %v1463_v1, %v811_v40 }
 0x30e   : > { %852 = vperm.xlu1 %1417, %v1449_v55  }
 0x30f   : > { %847 = vperm.xlu0 %1416, %v1451_v56  }
 0x312   : > { %857 = vperm.xlu1 %1417, %v1453_v57  }
 0x313   : > { %862 = vperm.xlu0 %1416, %v1455_v59  }
 0x316   : > { %867 = vperm.xlu1 %1417, %v1457_v61  }
 0x317   : > { %872 = vperm.xlu0 %1416, %v1459_v63  }
 0x31a   : > { %877 = vperm.xlu1 %1417, %v1461_v0  }
 0x31b   : > { %882 = vperm.xlu0 %1416, %v1463_v1  }
 0x371   : > { %v784_v6 = vpop.xlane.xlu0 %783 }
 0x372   : > { %v822_v10 = vadd.f32 %v814_v5, %v784_v6  ;;  %v778_v11 = vpop.xlane.xlu1 %777 }
 0x373   : > { %v820_v14 = vadd.f32 %v812_v8, %v778_v11  ;;  %v843_v11 = vld [vmem:[#allocation5 + $0x30] sm:$0xff] }
 0x374   : > { %831 = vst.msk [vmem:[#allocation4 + $0x10] sm:$0xff] %vm513_vm1, %v822_v10 }
 0x375   : > { %829 = vst.msk [vmem:[#allocation4] sm:$0xff] %vm513_vm1, %v820_v14  ;;  %v841_v14 = vld [vmem:[#allocation5 + $0x20] sm:$0xff] }
 0x376   : > { %v787_v19 = vpop.xlane.xlu1 %786 }
 0x377   : > { %v823_v30 = vadd.f32 %v815_v17, %v787_v19  ;;  %v844_v17 = vld [vmem:[#allocation5 + $0x38] sm:$0xff]  ;;  %v842_v19 = vld [vmem:[#allocation5 + $0x28] sm:$0xff] }
 0x379   : > { %832 = vst.msk [vmem:[#allocation4 + $0x18] sm:$0xff] %vm513_vm1, %v823_v30  ;;  %v781_v34 = vpop.xlane.xlu0 %780 }
 0x37a   : > { %v821_v36 = vadd.f32 %v813_v31, %v781_v34 }
 0x37b   : > { %v1024_v38 = vld [vmem:[#allocation4 + $0x10] sm:$0xff] }
 0x37c   : > { %830 = vst.msk [vmem:[#allocation4 + $0x8] sm:$0xff] %vm513_vm1, %v821_v36  ;;  %1464 = vrcp.f32 %v1024_v38  ;;  %v1022_v39 = vld [vmem:[#allocation4] sm:$0xff] }
 0x37d   : > { %1466 = vrcp.f32 %v1022_v39 }
 0x380   : > { %v1025_v43 = vld [vmem:[#allocation4 + $0x18] sm:$0xff] }
 0x381   : > { %1468 = vrcp.f32 %v1025_v43 }
 0x382   : > { %v790_v45 = vpop.xlane.xlu0 %789 }
 0x383   : > { %v824_v47 = vadd.f32 %v816_v33, %v790_v45  ;;  %v1023_v48 = vld [vmem:[#allocation4 + $0x8] sm:$0xff] }
 0x384   : > { %1470 = vrcp.f32 %v1023_v48 }
 0x385   : > { %833 = vst.msk [vmem:[#allocation4 + $0x20] sm:$0xff] %vm513_vm1, %v824_v47  ;;  %v1320_v47 = vld [vmem:[%s1578_s9 + $0x8] sm:$0xff]  }
 0x386   : > { %v1465_v52 = vpop.eup %1464  ;;  %v796_v54 = vpop.xlane.xlu0 %795 }
 0x387   : > { %v793_v60 = vpop.xlane.xlu1 %792  ;;  %v826_v62 = vadd.f32 %v818_v49, %v796_v54  ;;  %1058 = vperm.xlu1 %1417, %v1465_v52   ;;  %v1467_v41 = vpop.eup %1466  ;;  %v1095_v49 = vstv %s1094_s18  ;;  %v1310_v52 = vunpack.c.l.bf16 %v1320_v47 }
 0x388   : > { %v825_v3 = vadd.f32 %v817_v37, %v793_v60  ;;  %v1305_v60 = vld [vmem:[%s1578_s9] sm:$0xff]  }
 0x389   : > { %835 = vst.msk [vmem:[#allocation4 + $0x30] sm:$0xff] %vm513_vm1, %v826_v62 }
 0x38a   : > { %834 = vst.msk [vmem:[#allocation4 + $0x28] sm:$0xff] %vm513_vm1, %v825_v3 }
 0x38b   : > { %v799_v9 = vpop.xlane.xlu1 %798  ;;  %v1469_v12 = vpop.eup %1468  ;;  %1048 = vperm.xlu1 %1417, %v1467_v41   ;;  %v1306_v41 = vunpack.c.l.bf16 %v1305_v60 }
 0x38c   : > { %v827_v15 = vadd.f32 %v819_v7, %v799_v9  ;;  %1063 = vperm.xlu0 %1416, %v1469_v12   ;;  %v1026_v44 = vld [vmem:[#allocation4 + $0x20] sm:$0xff] }
 0x38d   : > { %1472 = vrcp.f32 %v1026_v44  ;;  %v1311_v44 = vunpack.c.h.bf16 %v1320_v47 }
 0x38e   : > { %836 = vst.msk [vmem:[#allocation4 + $0x38] sm:$0xff] %vm513_vm1, %v827_v15  ;;  %v1471_v16 = vpop.eup %1470  ;;  %v848_v27 = vpop.permute.xlu0 %847 }
 0x38f   : > { %v853_v26 = vpop.permute.xlu1 %852  ;;  %v885_v56 = vmul.f32 %v848_v27, %v837_v58 }
 0x390   : > { %1053 = vperm.xlu0 %1416, %v1471_v16   ;;  %v1028_v20 = vld [vmem:[#allocation4 + $0x30] sm:$0xff]  ;;  %v886_v0 = vmul.f32 %v853_v26, %v838_v53 }
 0x391   : > { %v1027_v21 = vld [vmem:[#allocation4 + $0x28] sm:$0xff]  ;;  %1474 = vrcp.f32 %v1028_v20 }
 0x392   : > { %1476 = vrcp.f32 %v1027_v21  ;;  %v863_v50 = vpop.permute.xlu0 %862 }
 0x393   : > { %v858_v29 = vpop.permute.xlu1 %857  ;;  %v888_v59 = vmul.f32 %v863_v50, %v840_v51 }
 0x394   : > { %v887_v55 = vmul.f32 %v858_v29, %v839_v28  ;;  %v1321_v29 = vld [vmem:[%s1578_s9 + $0x10] sm:$0xff]  }
 0x395   : > { %v1029_v22 = vld [vmem:[#allocation4 + $0x38] sm:$0xff]  ;;  %v1314_v50 = vunpack.c.l.bf16 %v1321_v29 }
 0x396   : > { %1478 = vrcp.f32 %v1029_v22  ;;  %v873_v10 = vpop.permute.xlu0 %872 }
 0x397   : > { %v1473_v23 = vpop.eup %1472  ;;  %v868_v8 = vpop.permute.xlu1 %867  ;;  %v890_v32 = vmul.f32 %v873_v10, %v842_v19 }
 0x398   : > { %1068 = vperm.xlu1 %1417, %v1473_v23   ;;  %v889_v31 = vmul.f32 %v868_v8, %v841_v14 }
 0x39a   : > { %v883_v18 = vpop.permute.xlu0 %882 }
 0x39b   : > { %v1475_v42 = vpop.eup %1474  ;;  %v878_v13 = vpop.permute.xlu1 %877  ;;  %v892_v36 = vmul.f32 %v883_v18, %v844_v17 }
 0x39c   : > { %v1477_v24 = vpop.eup %1476  ;;  %1078 = vperm.xlu1 %1417, %v1475_v42   ;;  %v891_v30 = vmul.f32 %v878_v13, %v843_v11 }
 0x39d   : > { %1073 = vperm.xlu0 %1416, %v1477_v24  }
 0x3a0   : > { %v1479_v25 = vpop.eup %1478 }
 0x3a1   : > { %1083 = vperm.xlu0 %1416, %v1479_v25   ;;  %v1307_v25 = vunpack.c.h.bf16 %v1305_v60 }
 0x3c1   : > { %v1383_v57 = vpop.f32.mrb[8].mxu0 }
 0x3c2   : > { %v996_v61 = vadd.f32 %v1383_v57, %v887_v55  ;;  %v963_v63 = vpop.f32.mrb[9].mxu0  ;;  %v1322_v55 = vld [vmem:[%s1578_s9 + $0x18] sm:$0xff]  }
 0x3c3   : > { %v994_v1 = vadd.f32 %v963_v63, %v885_v56  ;;  %v1384_v2 = vpop.f32.mrb[10].mxu0  ;;  %v1319_v17 = vunpack.c.h.bf16 %v1322_v55 }
 0x3c4   : > { %1005 = vst.msk [vmem:[#allocation5 + $0x10] sm:$0xff] %vm427_vm0, %v996_v61  ;;  %v997_v4 = vadd.f32 %v1384_v2, %v888_v59  ;;  %v966_v5 = vpop.f32.mrb[11].mxu0 }
 0x3c5   : > { %1003 = vst.msk [vmem:[#allocation5] sm:$0xff] %vm427_vm0, %v994_v1  ;;  %v995_v6 = vadd.f32 %v966_v5, %v886_v0  ;;  %v1318_v1 = vunpack.c.l.bf16 %v1322_v55 }
 0x3c6   : > { %1006 = vst.msk [vmem:[#allocation5 + $0x18] sm:$0xff] %vm427_vm0, %v997_v4  ;;  %v1315_v4 = vunpack.c.h.bf16 %v1321_v29 }
 0x3c7   : > { %1004 = vst.msk [vmem:[#allocation5 + $0x8] sm:$0xff] %vm427_vm0, %v995_v6 }
 0x3cb   : > { %v1040_v48 = vld [vmem:[#allocation5 + $0x10] sm:$0xff] }
 0x3cc   : > { %v1038_v62 = vld [vmem:[#allocation5] sm:$0xff] }
 0x3cd   : > { %v1041_v12 = vld [vmem:[#allocation5 + $0x18] sm:$0xff] }
 0x3ce   : > { %v1039_v42 = vld [vmem:[#allocation5 + $0x8] sm:$0xff] }
 0x3d1   : > { %v1387_v34 = vpop.f32.mrb[12].mxu0 }
 0x3d2   : > { %v1000_v38 = vadd.f32 %v1387_v34, %v891_v30  ;;  %v979_v39 = vpop.f32.mrb[13].mxu0 }
 0x3d3   : > { %v998_v43 = vadd.f32 %v979_v39, %v889_v31  ;;  %v1388_v33 = vpop.f32.mrb[14].mxu0 }
 0x3d4   : > { %1009 = vst.msk [vmem:[#allocation5 + $0x30] sm:$0xff] %vm427_vm0, %v1000_v38  ;;  %v1001_v45 = vadd.f32 %v1388_v33, %v892_v36  ;;  %v982_v46 = vpop.f32.mrb[15].mxu0 }
 0x3d5   : > { %1007 = vst.msk [vmem:[#allocation5 + $0x20] sm:$0xff] %vm427_vm0, %v998_v43  ;;  %v999_v35 = vadd.f32 %v982_v46, %v890_v32 }
 0x3d6   : > { %1010 = vst.msk [vmem:[#allocation5 + $0x38] sm:$0xff] %vm427_vm0, %v1001_v45 }
 0x3d7   : > { %1008 = vst.msk [vmem:[#allocation5 + $0x28] sm:$0xff] %vm427_vm0, %v999_v35 }
 0x3db   : > { %v1044_v57 = vld [vmem:[#allocation5 + $0x30] sm:$0xff] }
 0x3dc   : > { %v1042_v58 = vld [vmem:[#allocation5 + $0x20] sm:$0xff] }
 0x3dd   : > { %v1045_v11 = vld [vmem:[#allocation5 + $0x38] sm:$0xff] }
 0x3de   : > { %v1043_v63 = vld [vmem:[#allocation5 + $0x28] sm:$0xff] }
 0x406   : > { %v1059_v37 = vpop.permute.xlu1 %1058 }
 0x407   : > { %v1088_v54 = vmul.f32 %v1059_v37, %v1040_v48 }
 0x409   : > { %v1098_v40 = vmul.f32 %v1095_v49, %v1088_v54 }
 0x40a   : > { %v1049_v3 = vpop.permute.xlu1 %1048 }
 0x40b   : > { %v1122_v7 = vadd.f32 %v1310_v52, %v1098_v40  ;;  %v1086_v9 = vmul.f32 %v1049_v3, %v1038_v62  ;;  %v1064_v15 = vpop.permute.xlu0 %1063 }
 0x40c   : > { %v1089_v16 = vmul.f32 %v1064_v15, %v1041_v12 }
 0x40d   : > { %1130 = vst.msk [vmem:[%s1801_s22 + $0x10] sm:$0xff] %vm427_vm0, %v1122_v7  ;;  %v1096_v20 = vmul.f32 %v1095_v49, %v1086_v9 }
 0x40e   : > { %v1099_v21 = vmul.f32 %v1095_v49, %v1089_v16 }
 0x40f   : > { %v1120_v22 = vadd.f32 %v1306_v41, %v1096_v20  ;;  %v1054_v23 = vpop.permute.xlu0 %1053 }
 0x410   : > { %v1123_v24 = vadd.f32 %v1311_v44, %v1099_v21  ;;  %v1087_v26 = vmul.f32 %v1054_v23, %v1039_v42 }
 0x411   : > { %1128 = vst.msk [vmem:[%s1801_s22] sm:$0xff] %vm427_vm0, %v1120_v22 }
 0x412   : > { %1131 = vst.msk [vmem:[%s1801_s22 + $0x18] sm:$0xff] %vm427_vm0, %v1123_v24  ;;  %v1097_v27 = vmul.f32 %v1095_v49, %v1087_v26 }
 0x414   : > { %v1121_v28 = vadd.f32 %v1307_v25, %v1097_v27 }
 0x416   : > { %1129 = vst.msk [vmem:[%s1801_s22 + $0x8] sm:$0xff] %vm427_vm0, %v1121_v28 }
 0x417   : > { %v1069_v51 = vpop.permute.xlu1 %1068 }
 0x418   : > { %v1090_v53 = vmul.f32 %v1069_v51, %v1042_v58 }
 0x41a   : > { %v1100_v56 = vmul.f32 %v1095_v49, %v1090_v53 }
 0x41b   : > { %v1079_v59 = vpop.permute.xlu1 %1078 }
 0x41c   : > { %v1124_v61 = vadd.f32 %v1314_v50, %v1100_v56  ;;  %v1074_v0 = vpop.permute.xlu0 %1073  ;;  %v1092_v2 = vmul.f32 %v1079_v59, %v1044_v57 }
 0x41d   : > { %v1091_v5 = vmul.f32 %v1074_v0, %v1043_v63 }
 0x41e   : > { %1132 = vst.msk [vmem:[%s1801_s22 + $0x20] sm:$0xff] %vm427_vm0, %v1124_v61  ;;  %v1102_v6 = vmul.f32 %v1095_v49, %v1092_v2 }
 0x41f   : > { %v1101_v8 = vmul.f32 %v1095_v49, %v1091_v5 }
 0x420   : > { %v1126_v10 = vadd.f32 %v1318_v1, %v1102_v6  ;;  %v1084_v13 = vpop.permute.xlu0 %1083 }
 0x421   : > { %v1125_v14 = vadd.f32 %v1315_v4, %v1101_v8  ;;  %v1093_v18 = vmul.f32 %v1084_v13, %v1045_v11 }
 0x422   : > { %1134 = vst.msk [vmem:[%s1801_s22 + $0x30] sm:$0xff] %vm427_vm0, %v1126_v10 }
 0x423   : > { %1133 = vst.msk [vmem:[%s1801_s22 + $0x28] sm:$0xff] %vm427_vm0, %v1125_v14  ;;  %v1103_v19 = vmul.f32 %v1095_v49, %v1093_v18 }
 0x425   : > { %v1127_v30 = vadd.f32 %v1319_v17, %v1103_v19 }
 0x427   : > { %1135 = vst.msk [vmem:[%s1801_s22 + $0x38] sm:$0xff] %vm427_vm0, %v1127_v30 }
 0x428 PF: > { %s17_s25 = sadd.s32 1, %s1502_s25   ;;  %s1837_s23 = smov %s1498_s24 }
 0x429   : > { %p14_p5 = scmp.ge.s32.totalorder %s17_s25, 4   ;;  %s1838_s24 = smov %s1840_s0 }
 0x42b   :  { %16 = sbr.rel (!%p14_p5) target bundleno = 2 (0x2), region = 88 }

</bundles_post_ra>
